<compile_context>
chip_gen: v6e
topology: v6e:2x2x1
jax: 0.10.0
libtpu: 0.0.40
codegen_flags: <defaults>
</compile_context>

<pallas_src>
import jax
import jax.numpy as jnp
from jax.experimental import pallas as pl
from jax.experimental.pallas import tpu as pltpu

LANE = 128


def _round_up(n, m):
    return ((n + m - 1) // m) * m


def _sigmoid_via_tanh(z):
    # sigmoid(z) == 0.5 * (tanh(0.5 * z) + 1): exact identity, single EUP op.
    return 0.5 * jnp.tanh(0.5 * z) + 0.5


# ----------------------------------------------------------------------------
# Parameter preparation (done once, outside the kernels).
# ----------------------------------------------------------------------------
def prepare_params(wx_t, wh_t, bx, bh, hidden_size, *,
                   param_dtype=jnp.float32, lane=LANE):
    """Fuse / pad LSTMcell parameters for the TPU kernels.

    wx_t : (I, 4H)  x2h weight, pre-transposed (PyTorch stores (4H, I))
    wh_t : (H, 4H)  h2h weight, pre-transposed
    bx, bh : (4H,) or (1, 4H)
    param_dtype : dtype of the MXU weight operands (f32 exact, bf16 fast).
    """
    I = wx_t.shape[0]
    H = hidden_size
    Hp = _round_up(H, lane)

    b = (jnp.reshape(bx, (1, 4 * H)) +
         jnp.reshape(bh, (1, 4 * H))).astype(jnp.float32)          # fused bias

    def pad_gates(w):                       # (rows, 4H) -> (rows, 4Hp)
        r = w.shape[0]
        w4 = w.reshape(r, 4, H)
        return jnp.pad(w4, ((0, 0), (0, 0), (0, Hp - H))).reshape(r, 4 * Hp)

    wx_seq = pad_gates(wx_t).astype(param_dtype)                            # (I,  4Hp)
    wh_seq = jnp.pad(pad_gates(wh_t), ((0, Hp - H), (0, 0))).astype(param_dtype)  # (Hp, 4Hp)
    b_seq = pad_gates(b)                                                    # (1,  4Hp) f32

    return {
        # unpadded layout for the single-step cell (no wrapper reshaping needed)
        "wx": wx_t.astype(param_dtype), "wh": wh_t.astype(param_dtype), "b": b,
        # lane-aligned layout for the time-fused sequence kernel
        "wx_seq": wx_seq, "wh_seq": wh_seq, "b_seq": b_seq,
        "H": H, "Hp": Hp, "I": I,
    }


# ----------------------------------------------------------------------------
# Single-step cell kernel (the literal module forward).
# ----------------------------------------------------------------------------
def _lstm_cell_kernel(x_ref, h_ref, c_ref, wx_ref, wh_ref, b_ref,
                      h_out_ref, c_out_ref):
    H = c_ref.shape[1]
    gates = (
        jnp.dot(x_ref[...].astype(wx_ref.dtype), wx_ref[...],
                preferred_element_type=jnp.float32)
        + jnp.dot(h_ref[...].astype(wh_ref.dtype), wh_ref[...],
                  preferred_element_type=jnp.float32)
        + b_ref[...])
    i_g = _sigmoid_via_tanh(gates[:, 0 * H:1 * H])
    f_g = _sigmoid_via_tanh(gates[:, 1 * H:2 * H])
    g_g = jnp.tanh(gates[:, 2 * H:3 * H])
    o_g = _sigmoid_via_tanh(gates[:, 3 * H:4 * H])
    c_new = f_g * c_ref[...].astype(jnp.float32) + i_g * g_g
    h_new = o_g * jnp.tanh(c_new)
    h_out_ref[...] = h_new.astype(h_out_ref.dtype)
    c_out_ref[...] = c_new.astype(c_out_ref.dtype)


def lstm_cell(x, h_prev, c_prev, wx, wh, b):
    """Single LSTM cell step: (x, h_prev, c_prev) -> (h, c).

    All operands go straight into the kernel (no wrapper-side concat / pad),
    which matters for repeated decode-style single-step use.
    """
    B, H = c_prev.shape
    full = lambda a: pl.BlockSpec(a.shape, lambda: (0,) * a.ndim)
    return pl.pallas_call(
        _lstm_cell_kernel,
        out_shape=(jax.ShapeDtypeStruct((B, H), x.dtype),
                   jax.ShapeDtypeStruct((B, H), x.dtype)),
        grid=(),
        in_specs=[full(x), full(h_prev), full(c_prev),
                  full(wx), full(wh), full(b)],
        out_specs=(pl.BlockSpec((B, H), lambda: (0, 0)),
                   pl.BlockSpec((B, H), lambda: (0, 0))),
    )(x, h_prev, c_prev, wx, wh, b)


# ----------------------------------------------------------------------------
# Time-fused sequence kernel: grid over time CHUNKS, weights resident in VMEM,
# x-projection hoisted per chunk, h carried in scratch, c carried in the
# resident c_fin output block.
# ----------------------------------------------------------------------------
def _make_seq_kernel(batch, hp, time_chunk):
    def kernel(x_ref, h0_ref, c0_ref, wx_ref, wh_ref, b_ref,
               hs_ref, c_fin_ref, h_carry, gx_ref):
        @pl.when(pl.program_id(0) == 0)
        def _():
            h_carry[...] = h0_ref[...]
            c_fin_ref[...] = c0_ref[...]

        # Hoisted input projection for the whole chunk: one MXU pass with
        # M = time_chunk * batch and a single bias broadcast.  Staged in VMEM
        # scratch so only one (batch, 4Hp) slab is live in vregs per step.
        gx_ref[...] = (
            jnp.dot(x_ref[...].astype(wx_ref.dtype), wx_ref[...],
                    preferred_element_type=jnp.float32)
            + b_ref[...])

        h = h_carry[...]
        c = c_fin_ref[...]
        # TODO(synk): for tiny batch, stage Wh in MXU weight registers across
        # steps (pltpu.matmul_push_rhs / matmul_acc_lhs / matmul_pop) instead
        # of re-issuing jnp.dot with the same RHS each step.
        for t in range(time_chunk):           # static unroll inside one grid step
            r0 = t * batch
            gates = gx_ref[r0:r0 + batch, :] + jnp.dot(
                h.astype(wh_ref.dtype), wh_ref[...],
                preferred_element_type=jnp.float32)
            # TODO(synk): for Hp >= 1024, tile along the 4Hp axis so the full
            # (B, 4Hp) f32 gates value never lives in vregs at once.
            i_g = _sigmoid_via_tanh(gates[:, 0 * hp:1 * hp])
            f_g = _sigmoid_via_tanh(gates[:, 1 * hp:2 * hp])
            g_g = jnp.tanh(gates[:, 2 * hp:3 * hp])
            o_g = _sigmoid_via_tanh(gates[:, 3 * hp:4 * hp])
            c = f_g * c + i_g * g_g
            h = o_g * jnp.tanh(c)
            hs_ref[t] = h.astype(hs_ref.dtype)
        # Carry to the next chunk.  c lives in the resident c_fin output block
        # (constant index_map) so it hits HBM only once, after the last chunk.
        h_carry[...] = h
        c_fin_ref[...] = c
    return kernel


def lstm_sequence(xs, h0, c0, wx_seq, wh_seq, b_seq, *, hidden_size,
                  time_chunk=4):
    """Run the LSTM cell over xs: (T, B, I) -> (hs (T, B, H), c_T (B, H))."""
    T, B, I = xs.shape
    H = hidden_size
    Hp = wx_seq.shape[1] // 4
    tc = min(time_chunk, T)
    assert T % tc == 0, "T must be divisible by time_chunk"

    # Per-gate lane padding H -> Hp keeps every gate slice, the h/c carries and
    # the hs output lane-aligned in the serial loop.  NOTE: tuned for H >= 128;
    # at tiny H it costs a bounded amount of extra sub-vreg EUP/MXU work.
    h0p = jnp.pad(h0, ((0, 0), (0, Hp - H)))
    c0p = jnp.pad(c0, ((0, 0), (0, Hp - H)))
    xs2d = xs.reshape(T * B, I)               # rows grouped by time step

    kernel = _make_seq_kernel(B, Hp, tc)
    hs, c_fin = pl.pallas_call(
        kernel,
        out_shape=(jax.ShapeDtypeStruct((T, B, Hp), xs.dtype),
                   jax.ShapeDtypeStruct((B, Hp), xs.dtype)),
        grid=(T // tc,),
        in_specs=[
            pl.BlockSpec((tc * B, I), lambda i: (i, 0)),     # x chunk (streamed)
            pl.BlockSpec((B, Hp), lambda i: (0, 0)),         # h0   (resident)
            pl.BlockSpec((B, Hp), lambda i: (0, 0)),         # c0   (resident)
            pl.BlockSpec(wx_seq.shape, lambda i: (0, 0)),    # Wx   (resident)
            pl.BlockSpec(wh_seq.shape, lambda i: (0, 0)),    # Wh   (resident)
            pl.BlockSpec((1, 4 * Hp), lambda i: (0, 0)),     # bias (resident)
        ],
        out_specs=(pl.BlockSpec((tc, B, Hp), lambda i: (i, 0, 0)),  # h_t chunk
                   pl.BlockSpec((B, Hp), lambda i: (0, 0))),        # c carry/out
        scratch_shapes=[pltpu.VMEM((B, Hp), jnp.float32),            # h carry
                        pltpu.VMEM((tc * B, 4 * Hp), jnp.float32)],  # x-gates stage
        compiler_params=pltpu.CompilerParams(
            # The time axis is a true recurrence -> "arbitrary".
            # TODO(synk): on v7x (2 TCs) add a leading "parallel" grid axis when
            # an independent dimension exists (layers / directions / sequences).
            dimension_semantics=("arbitrary",),
            # v5e's default scoped VMEM is only 16 MiB; be explicit.  For large
            # H re-derive this (v7x has only 64 MiB physical VMEM) and/or tile
            # the resident weights along 4Hp / use bf16 params.
            vmem_limit_bytes=32 * 1024 * 1024,
        ),
    )(xs2d, h0p, c0p, wx_seq, wh_seq, b_seq)
    return hs[:, :, :H], c_fin[:, :H]


# ----------------------------------------------------------------------------
# Pure-JAX reference (matches the PyTorch module).
# ----------------------------------------------------------------------------
def lstm_cell_reference(x, h_prev, c_prev, wx, wh, bx, bh):
    gates = x @ wx + bx + h_prev @ wh + bh
    H = h_prev.shape[1]
    i = jax.nn.sigmoid(gates[:, 0 * H:1 * H])
    f = jax.nn.sigmoid(gates[:, 1 * H:2 * H])
    g = jnp.tanh(gates[:, 2 * H:3 * H])
    o = jax.nn.sigmoid(gates[:, 3 * H:4 * H])
    c = f * c_prev + i * g
    h = o * jnp.tanh(c)
    return h, c


if __name__ == "__main__":
    B, I, H = 8, 32, 32   # batch, input_size, hidden_size
    T = 8                 # sequence length for the time-fused variant

    key = jax.random.PRNGKey(0)
    kx, kh, kc, kwx, kwh, kbx, kbh, kxs = jax.random.split(key, 8)

    x = jax.random.normal(kx, (B, I), dtype=jnp.float32)
    h_prev = jax.random.normal(kh, (B, H), dtype=jnp.float32)
    c_prev = jax.random.normal(kc, (B, H), dtype=jnp.float32)
    xs = jax.random.normal(kxs, (T, B, I), dtype=jnp.float32)

    # PyTorch-Linear-style uniform init; weights stored pre-transposed.
    bound_x = 1.0 / jnp.sqrt(jnp.float32(I))
    bound_h = 1.0 / jnp.sqrt(jnp.float32(H))
    wx = jax.random.uniform(kwx, (I, 4 * H), jnp.float32, -bound_x, bound_x)
    wh = jax.random.uniform(kwh, (H, 4 * H), jnp.float32, -bound_h, bound_h)
    bx = jax.random.uniform(kbx, (1, 4 * H), jnp.float32, -bound_x, bound_x)
    bh = jax.random.uniform(kbh, (1, 4 * H), jnp.float32, -bound_h, bound_h)

    # f32 params: exact match to the f32 PyTorch module.
    p32 = prepare_params(wx, wh, bx, bh, H, param_dtype=jnp.float32)

    # --- single-step cell (the module's forward) ---
    cell_fn = jax.jit(lstm_cell)
    h_out, c_out = cell_fn(x, h_prev, c_prev, p32["wx"], p32["wh"], p32["b"])
    jax.block_until_ready((h_out, c_out))

    h_ref, c_ref = lstm_cell_reference(x, h_prev, c_prev, wx, wh, bx, bh)
    assert jnp.allclose(h_out, h_ref, atol=1e-4, rtol=1e-4), "h mismatch (cell)"
    assert jnp.allclose(c_out, c_ref, atol=1e-4, rtol=1e-4), "c mismatch (cell)"

    # pure-JAX sequence reference
    def ref_step(carry, x_t):
        h, c = carry
        h, c = lstm_cell_reference(x_t, h, c, wx, wh, bx, bh)
        return (h, c), h

    (hT_ref, cT_ref), hs_ref = jax.lax.scan(ref_step, (h_prev, c_prev), xs)

    # --- time-fused sequence, f32 MXU operands (exact) ---
    seq_fn = jax.jit(lstm_sequence, static_argnames=("hidden_size", "time_chunk"))
    hs_k, cT_k = seq_fn(xs, h_prev, c_prev, p32["wx_seq"], p32["wh_seq"],
                        p32["b_seq"], hidden_size=H, time_chunk=4)
    jax.block_until_ready((hs_k, cT_k))
    assert jnp.allclose(hs_k, hs_ref, atol=1e-4, rtol=1e-4), "h mismatch (seq f32)"
    assert jnp.allclose(cT_k, cT_ref, atol=1e-4, rtol=1e-4), "c mismatch (seq f32)"

    # --- same sequence with bf16 MXU operands (perf path; gate math stays f32) ---
    pbf = prepare_params(wx, wh, bx, bh, H, param_dtype=jnp.bfloat16)
    hs_b, cT_b = seq_fn(xs, h_prev, c_prev, pbf["wx_seq"], pbf["wh_seq"],
                        pbf["b_seq"], hidden_size=H, time_chunk=4)
    jax.block_until_ready((hs_b, cT_b))
    assert jnp.allclose(hs_b, hs_ref, atol=2e-2, rtol=2e-2), "h mismatch (seq bf16)"
    assert jnp.allclose(cT_b, cT_ref, atol=2e-2, rtol=2e-2), "c mismatch (seq bf16)"

    print("KERNEL_OK")
</pallas_src>

<mosaic_0001>
module attributes {stable_mosaic.version = 11 : i64} {
  func.func @_lstm_cell_kernel(%arg0: memref<8x32xf32, #tpu.memory_space<vmem>>, %arg1: memref<8x32xf32, #tpu.memory_space<vmem>>, %arg2: memref<8x32xf32, #tpu.memory_space<vmem>>, %arg3: memref<32x128xf32, #tpu.memory_space<vmem>>, %arg4: memref<32x128xf32, #tpu.memory_space<vmem>>, %arg5: memref<1x128xf32, #tpu.memory_space<vmem>>, %arg6: memref<8x32xf32, #tpu.memory_space<vmem>>, %arg7: memref<8x32xf32, #tpu.memory_space<vmem>>) attributes {dimension_semantics = [], scalar_prefetch = 0 : i64, scratch_operands = 0 : i64, tpu.core_type = #tpu.core_type<tc>} {
    %c0 = arith.constant 0 : index
    %c0_0 = arith.constant 0 : index
    %0 = vector.load %arg0[%c0, %c0_0] : memref<8x32xf32, #tpu.memory_space<vmem>>, vector<8x32xf32>
    %c0_1 = arith.constant 0 : index
    %c0_2 = arith.constant 0 : index
    %1 = vector.load %arg3[%c0_1, %c0_2] : memref<32x128xf32, #tpu.memory_space<vmem>>, vector<32x128xf32>
    %cst = arith.constant dense<0.000000e+00> : vector<8x128xf32>
    %2 = tpu.matmul %0, %1, %cst {dimension_numbers = #tpu.dot_dimension_numbers<[1], [0], [0], [1], [0, 0, 1, 1], [], []>} : vector<8x32xf32>, vector<32x128xf32>, vector<8x128xf32> -> vector<8x128xf32>
    %c0_3 = arith.constant 0 : index
    %c0_4 = arith.constant 0 : index
    %3 = vector.load %arg1[%c0_3, %c0_4] : memref<8x32xf32, #tpu.memory_space<vmem>>, vector<8x32xf32>
    %c0_5 = arith.constant 0 : index
    %c0_6 = arith.constant 0 : index
    %4 = vector.load %arg4[%c0_5, %c0_6] : memref<32x128xf32, #tpu.memory_space<vmem>>, vector<32x128xf32>
    %cst_7 = arith.constant dense<0.000000e+00> : vector<8x128xf32>
    %5 = tpu.matmul %3, %4, %cst_7 {dimension_numbers = #tpu.dot_dimension_numbers<[1], [0], [0], [1], [0, 0, 1, 1], [], []>} : vector<8x32xf32>, vector<32x128xf32>, vector<8x128xf32> -> vector<8x128xf32>
    %6 = arith.addf %2, %5 : vector<8x128xf32>
    %c0_8 = arith.constant 0 : index
    %c0_9 = arith.constant 0 : index
    %7 = vector.load %arg5[%c0_8, %c0_9] : memref<1x128xf32, #tpu.memory_space<vmem>>, vector<1x128xf32>
    %8 = vector.broadcast %7 : vector<1x128xf32> to vector<8x128xf32>
    %9 = arith.addf %6, %8 : vector<8x128xf32>
    %10 = vector.extract_strided_slice %9 {offsets = [0, 0], sizes = [8, 32], strides = [1, 1]} : vector<8x128xf32> to vector<8x32xf32>
    %cst_10 = arith.constant 5.000000e-01 : f32
    %11 = vector.broadcast %cst_10 : f32 to vector<8x32xf32>
    %12 = arith.mulf %11, %10 : vector<8x32xf32>
    %13 = math.tanh %12 : vector<8x32xf32>
    %cst_11 = arith.constant 5.000000e-01 : f32
    %14 = vector.broadcast %cst_11 : f32 to vector<8x32xf32>
    %15 = arith.mulf %14, %13 : vector<8x32xf32>
    %cst_12 = arith.constant 5.000000e-01 : f32
    %16 = vector.broadcast %cst_12 : f32 to vector<8x32xf32>
    %17 = arith.addf %15, %16 : vector<8x32xf32>
    %18 = vector.extract_strided_slice %9 {offsets = [0, 32], sizes = [8, 32], strides = [1, 1]} : vector<8x128xf32> to vector<8x32xf32>
    %cst_13 = arith.constant 5.000000e-01 : f32
    %19 = vector.broadcast %cst_13 : f32 to vector<8x32xf32>
    %20 = arith.mulf %19, %18 : vector<8x32xf32>
    %21 = math.tanh %20 : vector<8x32xf32>
    %cst_14 = arith.constant 5.000000e-01 : f32
    %22 = vector.broadcast %cst_14 : f32 to vector<8x32xf32>
    %23 = arith.mulf %22, %21 : vector<8x32xf32>
    %cst_15 = arith.constant 5.000000e-01 : f32
    %24 = vector.broadcast %cst_15 : f32 to vector<8x32xf32>
    %25 = arith.addf %23, %24 : vector<8x32xf32>
    %26 = vector.extract_strided_slice %9 {offsets = [0, 64], sizes = [8, 32], strides = [1, 1]} : vector<8x128xf32> to vector<8x32xf32>
    %27 = math.tanh %26 : vector<8x32xf32>
    %28 = vector.extract_strided_slice %9 {offsets = [0, 96], sizes = [8, 32], strides = [1, 1]} : vector<8x128xf32> to vector<8x32xf32>
    %cst_16 = arith.constant 5.000000e-01 : f32
    %29 = vector.broadcast %cst_16 : f32 to vector<8x32xf32>
    %30 = arith.mulf %29, %28 : vector<8x32xf32>
    %31 = math.tanh %30 : vector<8x32xf32>
    %cst_17 = arith.constant 5.000000e-01 : f32
    %32 = vector.broadcast %cst_17 : f32 to vector<8x32xf32>
    %33 = arith.mulf %32, %31 : vector<8x32xf32>
    %cst_18 = arith.constant 5.000000e-01 : f32
    %34 = vector.broadcast %cst_18 : f32 to vector<8x32xf32>
    %35 = arith.addf %33, %34 : vector<8x32xf32>
    %c0_19 = arith.constant 0 : index
    %c0_20 = arith.constant 0 : index
    %36 = vector.load %arg2[%c0_19, %c0_20] : memref<8x32xf32, #tpu.memory_space<vmem>>, vector<8x32xf32>
    %37 = arith.mulf %25, %36 : vector<8x32xf32>
    %38 = arith.mulf %17, %27 : vector<8x32xf32>
    %39 = arith.addf %37, %38 : vector<8x32xf32>
    %40 = math.tanh %39 : vector<8x32xf32>
    %41 = arith.mulf %35, %40 : vector<8x32xf32>
    %c0_21 = arith.constant 0 : index
    %c0_22 = arith.constant 0 : index
    %42 = vector.load %arg6[%c0_21, %c0_22] : memref<8x32xf32, #tpu.memory_space<vmem>>, vector<8x32xf32>
    tpu.vector_store %arg6[%c0_21, %c0_22], %41 {strides = array<i32>} : memref<8x32xf32, #tpu.memory_space<vmem>>, vector<8x32xf32>,
    %c0_23 = arith.constant 0 : index
    %c0_24 = arith.constant 0 : index
    %43 = vector.load %arg7[%c0_23, %c0_24] : memref<8x32xf32, #tpu.memory_space<vmem>>, vector<8x32xf32>
    tpu.vector_store %arg7[%c0_23, %c0_24], %39 {strides = array<i32>} : memref<8x32xf32, #tpu.memory_space<vmem>>, vector<8x32xf32>,
    return
  }
}

</mosaic_0001>

<bundles_post_ra>
// kernel: lstm_cell.1
= control target key start
LH: loop header
LB: loop body
LE: loop exit
PB: predicated region body
PF: predicated region fallthrough
CT: control target
= control target key end

     0   :  { %13 = vsyncpa [#allocation3], 0  ;;  %s615_s0 = inlined_call_operand.hbm [shape: f32[8,32], index: 0, kind: input, shape index: {}]   ;;  %s616_s1 = inlined_call_operand.hbm [shape: f32[8,32], index: 1, kind: input, shape index: {}]   ;;  %s617_s2 = inlined_call_operand.hbm [shape: f32[8,32], index: 2, kind: input, shape index: {}]   ;;  %s618_s3 = inlined_call_operand.hbm [shape: f32[32,128], index: 3, kind: input, shape index: {}]   ;;  %s619_s4 = inlined_call_operand.hbm [shape: f32[32,128], index: 4, kind: input, shape index: {}]   ;;  %s620_s5 = inlined_call_operand.vmem [shape: f32[1,128], index: 5, kind: input, shape index: {}]   ;;  %s621_s6 = inlined_call_operand.hbm [shape: f32[8,32], index: 6, kind: output, shape index: {0}]   ;;  %s622_s7 = inlined_call_operand.hbm [shape: f32[8,32], index: 7, kind: output, shape index: {1}]  }
   0x1   :  { %14 = vsyncpa [#allocation6], 0 }
   0x2   :  { %15 = vsyncpa [#allocation9], 0 }
   0x3   :  { %16 = vsyncpa [#allocation4], 0 }
   0x4   :  { %17 = vsyncpa [#allocation13], 0  ;;  %s527_s24 = smov [#allocation5]   ;;  %s528_s26 = smov [#allocation8]  }
   0x5   :  { %s34_s25 = sshll.u32 %s527_s24, 4  ;;  %s53_s27 = sshll.u32 %s528_s26, 4  ;;  %s35_s25 = int_to_ptr.vmem [resolvable:$true] %s34_s25  ;;  %s54_s27 = int_to_ptr.vmem [resolvable:$true] %s53_s27 }
   0x6   :  { %s385_s28 = scalar_lea.vmem %s35_s25, 128  ;;  %p390_p1 = scmp.lt.s32.totalorder %s35_s25, %s35_s25 }
   0x7   :  { %p386_p0 = scmp.ne.s32.totalorder %s35_s25, %s385_s28  ;;  %p391_p2 = scmp.lt.s32.totalorder %s385_s28, %s385_s28 }
   0x9   :  { %p392_p3 = por %p391_p2, %p390_p1 }
   0xb   :  { %p393_p4 = pnand %p392_p3, %p386_p0 }
   0xd   :  { %396 = shalt.err (!%p393_p4)
}
   0xe   :  { %37 = dma.hbm_to_vmem [thread:$0]  %s616_s1, 128, %s35_s25, [#allocation6]  }
   0xf   :  { %s405_s8 = scalar_lea.vmem %s54_s27, 512  ;;  %p410_p6 = scmp.lt.s32.totalorder %s54_s27, %s54_s27 }
  0x10   :  { %p406_p5 = scmp.ne.s32.totalorder %s54_s27, %s405_s8  ;;  %p411_p7 = scmp.lt.s32.totalorder %s405_s8, %s405_s8 }
  0x12   :  { %p412_p8 = por %p411_p7, %p410_p6 }
  0x14   :  { %p413_p9 = pnand %p412_p8, %p406_p5 }
  0x16   :  { %416 = shalt.err (!%p413_p9)
}
  0x17   :  { %s529_s9 = smov 128   ;;  %s530_s10 = smov 8  }
  0x18   :  { %59 = dma.hbm_to_vmem [thread:$0]  %s618_s3, 512, %s54_s27, [#allocation9], %s529_s9, %s529_s9, %s530_s10  }
  0x19   :  { %s531_s13 = smov [#allocation2]   ;;  %s532_s15 = smov [#allocation7]  }
  0x1a   :  { %s24_s14 = sshll.u32 %s531_s13, 4  ;;  %s44_s1 = sshll.u32 %s532_s15, 4  ;;  %s25_s14 = int_to_ptr.vmem [resolvable:$true] %s24_s14  ;;  %s45_s1 = int_to_ptr.vmem [resolvable:$true] %s44_s1 }
  0x1b   :  { %s425_s16 = scalar_lea.vmem %s25_s14, 128  ;;  %p430_p11 = scmp.lt.s32.totalorder %s25_s14, %s25_s14 }
  0x1c   :  { %p426_p10 = scmp.ne.s32.totalorder %s25_s14, %s425_s16  ;;  %p431_p12 = scmp.lt.s32.totalorder %s425_s16, %s425_s16 }
  0x1e   :  { %p432_p13 = por %p431_p12, %p430_p11 }
  0x20   :  { %p433_p0 = pnand %p432_p13, %p426_p10 }
  0x22   :  { %436 = shalt.err (!%p433_p0)
}
  0x23   :  { %27 = dma.hbm_to_vmem [thread:$0]  %s615_s0, 128, %s25_s14, [#allocation3]  }
  0x24   :  { %s445_s19 = scalar_lea.vmem %s45_s1, 128  ;;  %p450_p2 = scmp.lt.s32.totalorder %s45_s1, %s45_s1 }
  0x25   :  { %p446_p1 = scmp.ne.s32.totalorder %s45_s1, %s445_s19  ;;  %p451_p3 = scmp.lt.s32.totalorder %s445_s19, %s445_s19 }
  0x27   :  { %p452_p4 = por %p451_p3, %p450_p2 }
  0x29   :  { %p453_p5 = pnand %p452_p4, %p446_p1 }
  0x2b   :  { %456 = shalt.err (!%p453_p5)
}
  0x2c   :  { %47 = dma.hbm_to_vmem [thread:$0]  %s617_s2, 128, %s45_s1, [#allocation6]  }
  0x2d   :  { %s533_s21 = smov [#allocation10]  }
  0x2e   :  { %s65_s22 = sshll.u32 %s533_s21, 4  ;;  %s66_s22 = int_to_ptr.vmem [resolvable:$true] %s65_s22 }
  0x2f   :  { %s465_s23 = scalar_lea.vmem %s66_s22, 512  ;;  %p470_p7 = scmp.lt.s32.totalorder %s66_s22, %s66_s22 }
  0x30   :  { %p466_p6 = scmp.ne.s32.totalorder %s66_s22, %s465_s23  ;;  %p471_p8 = scmp.lt.s32.totalorder %s465_s23, %s465_s23 }
  0x32   :  { %p472_p9 = por %p471_p8, %p470_p7 }
  0x34   :  { %p473_p10 = pnand %p472_p9, %p466_p6 }
  0x36   :  { %476 = shalt.err (!%p473_p10)
}
  0x37   :  { %71 = dma.hbm_to_vmem [thread:$0]  %s619_s4, 512, %s66_s22, [#allocation9], %s529_s9, %s529_s9, %s530_s10  }
  0x38   :  { %517 = dma.done.wait [#allocation3], 128  }
  0x39   :  { %518 = vsyncadd [#allocation3], 4294967168 }
  0x3a   :  { %519 = dma.done.wait [#allocation6], 256  }
  0x3b   :  { %520 = vsyncadd [#allocation6], 4294967040 }
  0x3c   :  { %521 = dma.done.wait [#allocation9], 1024  }
  0x3d   :  { %522 = vsyncadd [#allocation9], 4294966272  ;;  %v534_v0 = vmov 0.0   ;;  %vm535_vm0 = vmmov 0   ;;  %v98_v1 = vld [vmem:[#allocation10 + $0x18] sm:$0xff]  ;;  %v97_v3 = vld [vmem:[#allocation10 + $0x10] sm:$0xff] }
  0x3e   :  { %335 = vmatprep.subr.mxu0 %v534_v0  ;;  %346 = vmatprep.subr.mxu1 %v534_v0  ;;  %v93_v2 = vld [vmem:[#allocation8 + $0x18] sm:$0xff]  ;;  %v92_v4 = vld [vmem:[#allocation8 + $0x10] sm:$0xff]  ;;  %v96_v5 = vld [vmem:[#allocation10 + $0x8] sm:$0xff]  ;;  %vm99_vm1 = vcmask 261120   ;;  %s536_s25 = smov 64   ;;  %s537_s26 = smov 32  }
  0x3f   :  { %343 = vmatprep.mubr.msk.f32.mxu0 %vm535_vm0, %v534_v0  ;;  %354 = vmatprep.mubr.msk.f32.mxu1 %vm535_vm0, %v534_v0  ;;  %v91_v6 = vld [vmem:[#allocation8 + $0x8] sm:$0xff]  ;;  %v95_v7 = vld [vmem:[#allocation10] sm:$0xff]  ;;  %v94_v9 = vld [vmem:[#allocation5] sm:$0xff]  ;;  %s539_s27 = smov [#allocation12]  }
  0x40   :  { %336 = vmatpush3.msra.mxu0 %v98_v1  ;;  %347 = vmatpush3.msra.mxu1 %v93_v2  ;;  %v90_v8 = vld [vmem:[#allocation8] sm:$0xff]  ;;  %v89_v10 = vld [vmem:[#allocation2] sm:$0xff]  ;;  %v259_v19 = vld [vmem:[#allocation7] sm:$0xff]  ;;  %s307_s28 = sshll.u32 %s539_s27, 4  ;;  %s308_s28 = int_to_ptr.vmem [resolvable:$true] %s307_s28 }
  0x41   :  { %337 = vmatprep.subr.mxu0 %v534_v0  ;;  %348 = vmatprep.subr.mxu1 %v534_v0  ;;  %v324_v13 = vld [vmem:[%s620_s5] ss:$0 sm:$0xff]  ;;  %s538_s5 = smov 96   ;;  %s477_s29 = scalar_lea.vmem %s308_s28, 128 }
  0x42   :  { %338 = vmatpush3.msra.mxu0 %v97_v3  ;;  %349 = vmatpush3.msra.mxu1 %v92_v4  ;;  %p478_p11 = scmp.ne.s32.totalorder %s308_s28, %s477_s29  ;;  %p482_p12 = scmp.lt.s32.totalorder %s308_s28, %s308_s28 }
  0x43   :  { %339 = vmatprep.subr.mxu0 %v534_v0  ;;  %350 = vmatprep.subr.mxu1 %v534_v0  ;;  %p483_p13 = scmp.lt.s32.totalorder %s477_s29, %s477_s29 }
  0x44   :  { %340 = vmatpush3.msra.mxu0 %v96_v5  ;;  %351 = vmatpush3.msra.mxu1 %v91_v6 }
  0x45   :  { %341 = vmatprep.subr.mxu0 %v534_v0  ;;  %352 = vmatprep.subr.mxu1 %v534_v0  ;;  %p484_p0 = por %p483_p13, %p482_p12 }
  0x46   :  { %342 = vmatpush3.msra.mxu0 %v95_v7  ;;  %353 = vmatpush3.msra.mxu1 %v90_v8 }
  0x47   :  { %344 = vmatmul.mubr.msk.f32.vlgmr.msra.gmra.mxu0 %vm99_vm1, %v94_v9  ;;  %355 = vmatmul.mubr.msk.f32.vlgmr.msra.gmra.mxu1 %vm99_vm1, %v89_v10  ;;  %p485_p1 = pnand %p484_p0, %p478_p11 }
 0x107   :  { %v169_v11 = vpop.f32.mrf.mxu0  ;;  %v242_v12 = vpop.f32.mrf.mxu1 }
 0x108   :  { %v243_v14 = vadd.f32 %v242_v12, %v169_v11 }
 0x109   :  { %v345_v15 = vpop.f32.mrf.mxu0  ;;  %v356_v16 = vpop.f32.mrf.mxu1 }
 0x10a   :  { %v253_v17 = vadd.f32 %v324_v13, %v243_v14 }
 0x10c   :  { %371 = vtanh.f32 %v253_v17  ;;  %v254_v20 = vmul.f32 0.5, %v253_v17 }
 0x10e   :  { %373 = vtanh.f32 %v254_v20 }
 0x119   :  { %v372_v18 = vpop.eup %371 }
 0x11a   :  { %266 = vrot.lane.b32.xlu0 %v372_v18, %s536_s25 }
 0x11b   :  { %v374_v21 = vpop.eup %373 }
 0x11c   :  { %v256_v22 = vmul.f32 0.5, %v374_v21 }
 0x11e   :  { %261 = vrot.lane.b32.xlu0 %v259_v19, %s537_s26  ;;  %v257_v23 = vadd.f32 0.5, %v256_v22 }
 0x18c   :  { %v267_v24 = vpop.permute.xlu0 %266 }
 0x18d   :  { %v269_v25 = vmul.f32 %v267_v24, %v257_v23 }
 0x18f   :  { %271 = vrot.lane.b32.xlu1 %v269_v25, %s537_s26 }
 0x190   :  { %v262_v26 = vpop.permute.xlu0 %261 }
 0x191   :  { %v264_v27 = vmul.f32 %v262_v26, %v257_v23 }
 0x201   :  { %v272_v28 = vpop.permute.xlu1 %271 }
 0x202   :  { %v274_v29 = vadd.f32 %v272_v28, %v264_v27 }
 0x204   :  { %375 = vtanh.f32 %v274_v29 }
 0x211   :  { %v376_v30 = vpop.eup %375 }
 0x212   :  { %277 = vrot.lane.b32.xlu1 %v376_v30, %s536_s25 }
 0x216   :  { %287 = vrot.lane.b32.xlu1 %v274_v29, %s538_s5 }
 0x284   :  { %v278_v31 = vpop.permute.xlu1 %277 }
 0x285   :  { %v280_v32 = vmul.f32 %v278_v31, %v257_v23 }
 0x287   :  { %282 = vrot.lane.b32.xlu0 %v280_v32, %s537_s26 }
 0x288   :  { %v288_v33 = vpop.permute.xlu1 %287 }
 0x289   :  { %290 = vst.msk [vmem:[#allocation12] sm:$0xff] %vm99_vm1, %v288_v33 }
 0x28a   :  { %488 = shalt.err (!%p485_p1)
}
 0x28b   :  { %310 = dma.vmem_to_hbm [thread:$0]  %s308_s28, 128, %s622_s7, [#allocation13]  }
 0x28c   :  { %s540_s9 = smov [#allocation11]  }
 0x28d   :  { %s297_s10 = sshll.u32 %s540_s9, 4  ;;  %s298_s10 = int_to_ptr.vmem [resolvable:$true] %s297_s10 }
 0x28e   :  { %s497_s11 = scalar_lea.vmem %s298_s10, 128  ;;  %p502_p3 = scmp.lt.s32.totalorder %s298_s10, %s298_s10 }
 0x28f   :  { %p498_p2 = scmp.ne.s32.totalorder %s298_s10, %s497_s11  ;;  %p503_p4 = scmp.lt.s32.totalorder %s497_s11, %s497_s11 }
 0x291   :  { %p504_p5 = por %p503_p4, %p502_p3 }
 0x293   :  { %p505_p6 = pnand %p504_p5, %p498_p2 }
 0x2f9   :  { %v283_v34 = vpop.permute.xlu0 %282 }
 0x2fa   :  { %285 = vst.msk [vmem:[#allocation11] sm:$0xff] %vm99_vm1, %v283_v34 }
 0x2fb   :  { %508 = shalt.err (!%p505_p6)
}
 0x2fc   :  { %300 = dma.vmem_to_hbm [thread:$0]  %s298_s10, 128, %s621_s6, [#allocation4]  }
 0x2fd   :  { %523 = dma.done.wait [#allocation4], 128  }
 0x2fe   :  { %524 = vsyncadd [#allocation4], 4294967168 }
 0x2ff   :  { %525 = dma.done.wait [#allocation13], 128  }
 0x300   :  { %526 = vsyncadd [#allocation13], 4294967168 }
 0x301   :  { %317 = vsyncpa [#allocation3], 1 }
 0x302   :  { %318 = vsyncpa [#allocation6], 1 }
 0x303   :  { %319 = vsyncpa [#allocation9], 1 }
 0x304   :  { %320 = vsyncpa [#allocation4], 1 }
 0x305   :  { %321 = vsyncpa [#allocation13], 1 }

</bundles_post_ra>
